<compile_context>
chip_gen: v7x
topology: tpu7x:2x2x1
jax: 0.10.0
libtpu: 0.0.40
codegen_flags: <defaults>
</compile_context>

<pallas_src>
import functools

import jax
import jax.numpy as jnp
from jax.experimental import pallas as pl
from jax.experimental.pallas import tpu as pltpu


def _round_up(x, m):
    return (x + m - 1) // m * m


def _node_embedding_kernel(ids_ref, table_ref, out_ref, *, num_ids):
    """ids_ref: [tm, T+1] int32 (token ids + offset node id), table_ref: [V_pad, E] bf16."""
    ids = ids_ref[...]                                    # [tm, T+1] int32
    tm = ids.shape[0]
    v_pad = table_ref.shape[0]

    # Summed one-hot counts over (subtokens + node id), built directly in bf16
    # (exact for integer counts <= 256); no explicit zeros-init — start from
    # the first compare.  This is the VALU hot loop once the MXU is fed.
    iota = jax.lax.broadcasted_iota(jnp.int32, (tm, v_pad), 1)   # [tm, V_pad]
    counts = (ids[:, 0:1] == iota).astype(jnp.bfloat16)
    for t in range(1, num_ids):  # static, small trip count (T+1)
        counts = counts + (ids[:, t:t + 1] == iota).astype(jnp.bfloat16)

    # Single fused gather-and-sum: [tm, V_pad] @ [V_pad, E] on the MXU, f32 acc.
    # Zero PAD / pad rows of the table make PAD ids exact no-ops.
    out_ref[...] = jnp.dot(counts, table_ref[...],
                           preferred_element_type=jnp.float32).astype(out_ref.dtype)


def node_embedding_forward(token_ids, node_ids, token_table, node_table,
                           *, token_pad_idx=0, node_pad_idx=0, tile_n=256):
    """token_ids: [N, T] int, node_ids: [N] int, tables: [V, E] f32 -> [N, E] f32.

    Tables are quantized to bf16 internally for the MXU fast path.
    """
    n, t = token_ids.shape
    v_tok, e = token_table.shape
    v_node, e2 = node_table.shape
    assert e == e2, "embedding sizes must match"

    # nn.Embedding(padding_idx=...) semantics: PAD rows are zero.
    token_table = token_table.at[token_pad_idx].set(0.0)
    node_table = node_table.at[node_pad_idx].set(0.0)

    # Fused bf16 table [V_pad, E]; vocab (contraction) dim zero-padded to x128.
    v_total = v_tok + v_node
    v_pad = _round_up(v_total, 128)
    table = jnp.zeros((v_pad, e), jnp.bfloat16)
    table = table.at[:v_tok].set(token_table.astype(jnp.bfloat16))
    table = table.at[v_tok:v_total].set(node_table.astype(jnp.bfloat16))

    # Fused id matrix [N, T+1]: token ids as-is, node id offset into table rows.
    ids = jnp.concatenate(
        [token_ids.astype(jnp.int32),
         node_ids.reshape(n, 1).astype(jnp.int32) + v_tok], axis=1)

    # Pick an effective tile (multiple of 8, capped by requested tile_n) and pad
    # N up to a multiple of it with PAD rows; padded rows are sliced off below.
    tile_n = max(8, min(tile_n, _round_up(n, 8)))
    n_pad = _round_up(n, tile_n)
    if n_pad != n:
        pad_row = jnp.concatenate(
            [jnp.full((1, t), token_pad_idx, jnp.int32),
             jnp.full((1, 1), node_pad_idx + v_tok, jnp.int32)], axis=1)
        ids = jnp.concatenate([ids, jnp.tile(pad_row, (n_pad - n, 1))], axis=0)

    kernel = functools.partial(_node_embedding_kernel, num_ids=t + 1)

    out = pl.pallas_call(
        kernel,
        out_shape=jax.ShapeDtypeStruct((n_pad, e), jnp.float32),
        grid_spec=pltpu.PrefetchScalarGridSpec(
            num_scalar_prefetch=0,
            grid=(n_pad // tile_n,),
            in_specs=[
                pl.BlockSpec((tile_n, t + 1), lambda i: (i, 0)),   # fused ids tile
                pl.BlockSpec((v_pad, e), lambda i: (0, 0)),        # fused table (resident)
            ],
            out_specs=pl.BlockSpec((tile_n, e), lambda i: (i, 0)),
        ),
        compiler_params=pltpu.CompilerParams(
            dimension_semantics=("parallel",),          # megacore on v7x
            vmem_limit_bytes=48 * 1024 * 1024),
    )(ids, table)

    return out[:n]


def _reference(token_ids, node_ids, token_table, node_table, pad=0):
    # Reference uses the same bf16-quantized tables as the kernel's MXU path so
    # the comparison isolates gather/sum correctness (tables are bf16 on-chip).
    tok_tab = token_table.at[pad].set(0.0).astype(jnp.bfloat16).astype(jnp.float32)
    node_tab = node_table.at[pad].set(0.0).astype(jnp.bfloat16).astype(jnp.float32)
    return tok_tab[token_ids].sum(axis=1) + node_tab[node_ids]


if __name__ == "__main__":
    # Small synthetic shapes consistent with the module.
    N = 16          # number of graph nodes
    T = 8           # subtokens per node (graph.ndata[TOKEN] is [N, T])
    E = 32          # embedding_size
    V_TOK = 64      # token vocabulary size
    V_NODE = 32     # node-type vocabulary size
    PAD = 0         # padding_idx for both vocabularies

    key = jax.random.PRNGKey(0)
    k1, k2, k3, k4 = jax.random.split(key, 4)

    token_table = jax.random.normal(k1, (V_TOK, E), dtype=jnp.float32)
    node_table = jax.random.normal(k2, (V_NODE, E), dtype=jnp.float32)

    # Deterministic ids; sprinkle some PAD tokens in the trailing subtoken slots.
    token_ids = jax.random.randint(k3, (N, T), 0, V_TOK, dtype=jnp.int32)
    token_ids = token_ids.at[:, T - 2:].set(PAD)
    node_ids = jax.random.randint(k4, (N,), 0, V_NODE, dtype=jnp.int32)

    out = node_embedding_forward(token_ids, node_ids, token_table, node_table,
                                 token_pad_idx=PAD, node_pad_idx=PAD)
    out = jax.block_until_ready(out)

    ref = _reference(token_ids, node_ids, token_table, node_table, pad=PAD)
    assert out.shape == (N, E)
    assert jnp.allclose(out, ref, atol=1e-4, rtol=1e-4), "mismatch vs pure-JAX reference"

    print("KERNEL_OK")
</pallas_src>

<mosaic_0001>
module attributes {stable_mosaic.version = 11 : i64} {
  func.func @_node_embedding_kernel(%arg0: i32, %arg1: memref<16x9xi32, #tpu.memory_space<vmem>>, %arg2: memref<128x32xbf16, #tpu.memory_space<vmem>>, %arg3: memref<16x32xf32, #tpu.memory_space<vmem>>) attributes {dimension_semantics = [#tpu.dimension_semantics<parallel>], iteration_bounds = array<i64: 1>, scalar_prefetch = 0 : i64, scratch_operands = 0 : i64, tpu.core_type = #tpu.core_type<tc>, window_params = [{transform_indices = @transform_0, window_bounds = array<i64: 16, 9>}, {pipeline_mode = #tpu.pipeline_mode<synchronous>, transform_indices = @transform_1, window_bounds = array<i64: 128, 32>}, {transform_indices = @transform_2, window_bounds = array<i64: 16, 32>}]} {
    %c0 = arith.constant 0 : index
    %c0_0 = arith.constant 0 : index
    %0 = vector.load %arg1[%c0, %c0_0] : memref<16x9xi32, #tpu.memory_space<vmem>>, vector<16x9xi32>
    %1 = tpu.iota {dimensions = array<i32: 1>} : vector<16x128xi32>
    %2 = vector.extract_strided_slice %0 {offsets = [0, 0], sizes = [16, 1], strides = [1, 1]} : vector<16x9xi32> to vector<16x1xi32>
    %3 = vector.broadcast %2 : vector<16x1xi32> to vector<16x128xi32>
    %4 = arith.cmpi eq, %3, %1 : vector<16x128xi32>
    %5 = arith.extui %4 : vector<16x128xi1> to vector<16x128xi32>
    %6 = arith.sitofp %5 : vector<16x128xi32> to vector<16x128xf32>
    %7 = arith.truncf %6 : vector<16x128xf32> to vector<16x128xbf16>
    %8 = vector.extract_strided_slice %0 {offsets = [0, 1], sizes = [16, 1], strides = [1, 1]} : vector<16x9xi32> to vector<16x1xi32>
    %9 = vector.broadcast %8 : vector<16x1xi32> to vector<16x128xi32>
    %10 = arith.cmpi eq, %9, %1 : vector<16x128xi32>
    %11 = arith.extui %10 : vector<16x128xi1> to vector<16x128xi32>
    %12 = arith.sitofp %11 : vector<16x128xi32> to vector<16x128xf32>
    %13 = arith.truncf %12 : vector<16x128xf32> to vector<16x128xbf16>
    %14 = arith.addf %7, %13 : vector<16x128xbf16>
    %15 = vector.extract_strided_slice %0 {offsets = [0, 2], sizes = [16, 1], strides = [1, 1]} : vector<16x9xi32> to vector<16x1xi32>
    %16 = vector.broadcast %15 : vector<16x1xi32> to vector<16x128xi32>
    %17 = arith.cmpi eq, %16, %1 : vector<16x128xi32>
    %18 = arith.extui %17 : vector<16x128xi1> to vector<16x128xi32>
    %19 = arith.sitofp %18 : vector<16x128xi32> to vector<16x128xf32>
    %20 = arith.truncf %19 : vector<16x128xf32> to vector<16x128xbf16>
    %21 = arith.addf %14, %20 : vector<16x128xbf16>
    %22 = vector.extract_strided_slice %0 {offsets = [0, 3], sizes = [16, 1], strides = [1, 1]} : vector<16x9xi32> to vector<16x1xi32>
    %23 = vector.broadcast %22 : vector<16x1xi32> to vector<16x128xi32>
    %24 = arith.cmpi eq, %23, %1 : vector<16x128xi32>
    %25 = arith.extui %24 : vector<16x128xi1> to vector<16x128xi32>
    %26 = arith.sitofp %25 : vector<16x128xi32> to vector<16x128xf32>
    %27 = arith.truncf %26 : vector<16x128xf32> to vector<16x128xbf16>
    %28 = arith.addf %21, %27 : vector<16x128xbf16>
    %29 = vector.extract_strided_slice %0 {offsets = [0, 4], sizes = [16, 1], strides = [1, 1]} : vector<16x9xi32> to vector<16x1xi32>
    %30 = vector.broadcast %29 : vector<16x1xi32> to vector<16x128xi32>
    %31 = arith.cmpi eq, %30, %1 : vector<16x128xi32>
    %32 = arith.extui %31 : vector<16x128xi1> to vector<16x128xi32>
    %33 = arith.sitofp %32 : vector<16x128xi32> to vector<16x128xf32>
    %34 = arith.truncf %33 : vector<16x128xf32> to vector<16x128xbf16>
    %35 = arith.addf %28, %34 : vector<16x128xbf16>
    %36 = vector.extract_strided_slice %0 {offsets = [0, 5], sizes = [16, 1], strides = [1, 1]} : vector<16x9xi32> to vector<16x1xi32>
    %37 = vector.broadcast %36 : vector<16x1xi32> to vector<16x128xi32>
    %38 = arith.cmpi eq, %37, %1 : vector<16x128xi32>
    %39 = arith.extui %38 : vector<16x128xi1> to vector<16x128xi32>
    %40 = arith.sitofp %39 : vector<16x128xi32> to vector<16x128xf32>
    %41 = arith.truncf %40 : vector<16x128xf32> to vector<16x128xbf16>
    %42 = arith.addf %35, %41 : vector<16x128xbf16>
    %43 = vector.extract_strided_slice %0 {offsets = [0, 6], sizes = [16, 1], strides = [1, 1]} : vector<16x9xi32> to vector<16x1xi32>
    %44 = vector.broadcast %43 : vector<16x1xi32> to vector<16x128xi32>
    %45 = arith.cmpi eq, %44, %1 : vector<16x128xi32>
    %46 = arith.extui %45 : vector<16x128xi1> to vector<16x128xi32>
    %47 = arith.sitofp %46 : vector<16x128xi32> to vector<16x128xf32>
    %48 = arith.truncf %47 : vector<16x128xf32> to vector<16x128xbf16>
    %49 = arith.addf %42, %48 : vector<16x128xbf16>
    %50 = vector.extract_strided_slice %0 {offsets = [0, 7], sizes = [16, 1], strides = [1, 1]} : vector<16x9xi32> to vector<16x1xi32>
    %51 = vector.broadcast %50 : vector<16x1xi32> to vector<16x128xi32>
    %52 = arith.cmpi eq, %51, %1 : vector<16x128xi32>
    %53 = arith.extui %52 : vector<16x128xi1> to vector<16x128xi32>
    %54 = arith.sitofp %53 : vector<16x128xi32> to vector<16x128xf32>
    %55 = arith.truncf %54 : vector<16x128xf32> to vector<16x128xbf16>
    %56 = arith.addf %49, %55 : vector<16x128xbf16>
    %57 = vector.extract_strided_slice %0 {offsets = [0, 8], sizes = [16, 1], strides = [1, 1]} : vector<16x9xi32> to vector<16x1xi32>
    %58 = vector.broadcast %57 : vector<16x1xi32> to vector<16x128xi32>
    %59 = arith.cmpi eq, %58, %1 : vector<16x128xi32>
    %60 = arith.extui %59 : vector<16x128xi1> to vector<16x128xi32>
    %61 = arith.sitofp %60 : vector<16x128xi32> to vector<16x128xf32>
    %62 = arith.truncf %61 : vector<16x128xf32> to vector<16x128xbf16>
    %63 = arith.addf %56, %62 : vector<16x128xbf16>
    %c0_1 = arith.constant 0 : index
    %c0_2 = arith.constant 0 : index
    %64 = vector.load %arg2[%c0_1, %c0_2] : memref<128x32xbf16, #tpu.memory_space<vmem>>, vector<128x32xbf16>
    %cst = arith.constant dense<0.000000e+00> : vector<16x32xf32>
    %65 = tpu.matmul %63, %64, %cst {dimension_numbers = #tpu.dot_dimension_numbers<[1], [0], [0], [1], [0, 0, 1, 1], [], []>} : vector<16x128xbf16>, vector<128x32xbf16>, vector<16x32xf32> -> vector<16x32xf32>
    %c0_3 = arith.constant 0 : index
    %c0_4 = arith.constant 0 : index
    %66 = vector.load %arg3[%c0_3, %c0_4] : memref<16x32xf32, #tpu.memory_space<vmem>>, vector<16x32xf32>
    tpu.vector_store %arg3[%c0_3, %c0_4], %65 {strides = array<i32>} : memref<16x32xf32, #tpu.memory_space<vmem>>, vector<16x32xf32>,
    return
  }
  func.func @transform_0(%arg0: i32) -> (i32, i32) {
    %c0_i32 = arith.constant 0 : i32
    %c0_i32_0 = arith.constant 0 : i32
    return %arg0, %c0_i32 : i32, i32
  }
  func.func @transform_1(%arg0: i32) -> (i32, i32) {
    %c0_i32 = arith.constant 0 : i32
    %c0_i32_0 = arith.constant 0 : i32
    %c0_i32_1 = arith.constant 0 : i32
    return %c0_i32, %c0_i32_0 : i32, i32
  }
  func.func @transform_2(%arg0: i32) -> (i32, i32) {
    %c0_i32 = arith.constant 0 : i32
    %c0_i32_0 = arith.constant 0 : i32
    return %arg0, %c0_i32 : i32, i32
  }
}

</mosaic_0001>

<bundles_post_ra>
// kernel: tpu_custom_call.1
= control target key start
LH: loop header
LB: loop body
LE: loop exit
PB: predicated region body
PF: predicated region fallthrough
CT: control target
= control target key end

     0   :  { %v381_v1 = vmov 1   ;;  %v382_v2 = vmov 0   ;;  %v383_v4 = vmov 0.0   ;;  %s479_s0 = inlined_call_operand.vmem [shape: s32[16,9], index: 0, kind: input, shape index: {}]   ;;  %s480_s1 = inlined_call_operand.vmem [shape: bf16[128,32], index: 1, kind: input, shape index: {}]   ;;  %s481_s2 = inlined_call_operand.hbm [shape: f32[16,32], index: 2, kind: output, shape index: {}]  }
   0x1   :  { %v13_v0 = vld [vmem:[%s479_s0] sm:$0xff]  ;;  %336 = vset.pattern.permute.xlu1 %v381_v1  ;;  %335 = vset.pattern.permute.xlu0 %v382_v2  ;;  %v14_v3 = vld [vmem:[%s479_s0 + $0x8] sm:$0xff] }
   0x2   :  { %31 = vperm.xlu1 %336, %v13_v0   ;;  %18 = vperm.xlu0 %335, %v13_v0  }
   0x3   :  { %301 = vmatprep.subr.bf16.mxu0 %v383_v4 }
   0x6   :  { %34 = vperm.xlu1 %336, %v14_v3   ;;  %21 = vperm.xlu0 %335, %v14_v3  }
   0x7   :  { %7 = vsyncpa [#allocation3], 0  ;;  %v384_v5 = vmov 2   ;;  %v385_v6 = vmov 3   ;;  %v386_v7 = vmov 4   ;;  %v387_v8 = vmov 5  }
   0x8   :  { %v349_v9 = vld [vmem:[%s480_s1] sm:$0xff]   ;;  %v388_v10 = vmov 6   ;;  %v350_v11 = vld [vmem:[%s480_s1 + $0x8] sm:$0xff]   ;;  %v389_v12 = vmov 8   ;;  %v351_v13 = vld [vmem:[%s480_s1 + $0x10] sm:$0xff]   ;;  %v390_v16 = vmov 7   ;;  %v15_v28 = vlaneseq }
   0x9   :  { %302 = vmatpush3.bf16.msra.mxu0 %v349_v9  ;;  %v352_v14 = vld [vmem:[%s480_s1 + $0x18] sm:$0xff]   ;;  %v353_v15 = vld [vmem:[%s480_s1 + $0x20] sm:$0xff]   ;;  %v354_v17 = vld [vmem:[%s480_s1 + $0x28] sm:$0xff]   ;;  %vm391_vm0 = vmmov 0  }
   0xa   :  { %338 = vset.pattern.permute.xlu1 %v384_v5  ;;  %337 = vset.pattern.permute.xlu0 %v384_v5  ;;  %v355_v18 = vld [vmem:[%s480_s1 + $0x30] sm:$0xff]   ;;  %v356_v19 = vld [vmem:[%s480_s1 + $0x38] sm:$0xff]   ;;  %v16_v31 = vand.u32 127, %v15_v28  ;;  %s392_s1 = smov [#allocation2]  }
   0xb   :  { %48 = vperm.xlu1 %338, %v14_v3   ;;  %45 = vperm.xlu0 %337, %v13_v0   ;;  %s255_s28 = sshll.u32 %s392_s1, 4  ;;  %s256_s28 = int_to_ptr.vmem [resolvable:$true] %s255_s28 }
   0xc   :  { %303 = vmatprep.subr.bf16.mxu0 %v383_v4  ;;  %317 = vmatprep.mubr.msk.bf16.mxu0 %vm391_vm0, %v383_v4  ;;  %s357_s29 = scalar_lea.vmem %s256_s28, 256  ;;  %p362_p1 = scmp.lt.s32.totalorder %s256_s28, %s256_s28 }
   0xd   :  { %304 = vmatpush3.bf16.msra.mxu0 %v350_v11  ;;  %p358_p0 = scmp.ne.s32.totalorder %s256_s28, %s357_s29  ;;  %p363_p2 = scmp.lt.s32.totalorder %s357_s29, %s357_s29 }
   0xe   :  { %305 = vmatprep.subr.bf16.mxu0 %v383_v4 }
   0xf   :  { %339 = vset.pattern.permute.xlu1 %v385_v6  ;;  %340 = vset.pattern.permute.xlu0 %v385_v6  ;;  %p364_p3 = por %p363_p2, %p362_p1 }
  0x10   :  { %59 = vperm.xlu1 %339, %v13_v0   ;;  %62 = vperm.xlu0 %340, %v14_v3  }
  0x11   :  { %306 = vmatpush3.bf16.msra.mxu0 %v351_v13  ;;  %p365_p4 = pnand %p364_p3, %p358_p0 }
  0x12   :  { %307 = vmatprep.subr.bf16.mxu0 %v383_v4 }
  0x14   :  { %341 = vset.pattern.permute.xlu1 %v386_v7  ;;  %342 = vset.pattern.permute.xlu0 %v387_v8 }
  0x15   :  { %73 = vperm.xlu1 %341, %v13_v0   ;;  %87 = vperm.xlu0 %342, %v13_v0  }
  0x16   :  { %308 = vmatpush3.bf16.msra.mxu0 %v352_v14 }
  0x17   :  { %309 = vmatprep.subr.bf16.mxu0 %v383_v4 }
  0x19   :  { %76 = vperm.xlu1 %341, %v14_v3   ;;  %345 = vset.pattern.permute.xlu0 %v388_v10 }
  0x1a   :  { %104 = vperm.xlu0 %345, %v14_v3   ;;  %310 = vmatpush3.bf16.msra.mxu0 %v353_v15 }
  0x1b   :  { %311 = vmatprep.subr.bf16.mxu0 %v383_v4 }
  0x1d   :  { %343 = vset.pattern.permute.xlu1 %v387_v8 }
  0x1e   :  { %90 = vperm.xlu1 %343, %v14_v3   ;;  %347 = vset.pattern.permute.xlu0 %v389_v12 }
  0x1f   :  { %129 = vperm.xlu0 %347, %v13_v0   ;;  %312 = vmatpush3.bf16.msra.mxu0 %v354_v17 }
  0x20   :  { %313 = vmatprep.subr.bf16.mxu0 %v383_v4 }
  0x22   :  { %344 = vset.pattern.permute.xlu1 %v388_v10 }
  0x23   :  { %101 = vperm.xlu1 %344, %v13_v0   ;;  %314 = vmatpush3.bf16.msra.mxu0 %v355_v18 }
  0x24   :  { %315 = vmatprep.subr.bf16.mxu0 %v383_v4 }
  0x27   :  { %346 = vset.pattern.permute.xlu1 %v390_v16  ;;  %316 = vmatpush3.bf16.msra.mxu0 %v356_v19 }
  0x28   :  { %115 = vperm.xlu1 %346, %v13_v0  }
  0x2c   :  { %118 = vperm.xlu1 %346, %v14_v3  }
  0x30   :  { %348 = vset.pattern.permute.xlu1 %v389_v12 }
  0x31   :  { %132 = vperm.xlu1 %348, %v14_v3  }
  0x81   :  { %v32_v20 = vpop.permute.xlu1 %31  ;;  %v19_v22 = vpop.permute.xlu0 %18 }
  0x82   :  { %vm23_vm1 = vcmp.eq.s32.totalorder %v19_v22, %v16_v31  ;;  %vm36_vm4 = vcmp.eq.s32.totalorder %v32_v20, %v16_v31 }
  0x83   :  { %v266_v34 = vsel %vm23_vm1, 1.0, %v383_v4  ;;  %v268_v37 = vsel %vm36_vm4, 1.0, %v383_v4 }
  0x85   :  { %v35_v21 = vpop.permute.xlu1 %34  ;;  %v22_v24 = vpop.permute.xlu0 %21 }
  0x86   :  { %vm37_vm2 = vcmp.eq.s32.totalorder %v35_v21, %v16_v31  ;;  %vm24_vm3 = vcmp.eq.s32.totalorder %v22_v24, %v16_v31 }
  0x87   :  { %v269_v35 = vsel %vm37_vm2, 1.0, %v383_v4  ;;  %v267_v36 = vsel %vm24_vm3, 1.0, %v383_v4  ;;  %vm247_vm3 = vcmask 261120  }
  0x88   :  { %v42_v41 = vpack.c.bf16 %v269_v35, %v268_v37  ;;  %v29_v42 = vpack.c.bf16 %v267_v36, %v266_v34 }
  0x8a   :  { %v49_v23 = vpop.permute.xlu1 %48  ;;  %v46_v26 = vpop.permute.xlu0 %45  ;;  %v43_v48 = vadd.bf16 %v42_v41, %v29_v42 }
  0x8b   :  { %vm51_vm5 = vcmp.eq.s32.totalorder %v49_v23, %v16_v31  ;;  %vm50_vm6 = vcmp.eq.s32.totalorder %v46_v26, %v16_v31 }
  0x8c   :  { %v271_v38 = vsel %vm51_vm5, 1.0, %v383_v4  ;;  %v270_v39 = vsel %vm50_vm6, 1.0, %v383_v4 }
  0x8d   :  { %v56_v46 = vpack.c.bf16 %v271_v38, %v270_v39 }
  0x8f   :  { %v60_v25 = vpop.permute.xlu1 %59  ;;  %v63_v30 = vpop.permute.xlu0 %62  ;;  %v57_v54 = vadd.bf16 %v56_v46, %v43_v48 }
  0x90   :  { %vm64_vm7 = vcmp.eq.s32.totalorder %v60_v25, %v16_v31  ;;  %vm65_vm8 = vcmp.eq.s32.totalorder %v63_v30, %v16_v31 }
  0x91   :  { %v272_v43 = vsel %vm64_vm7, 1.0, %v383_v4  ;;  %v273_v44 = vsel %vm65_vm8, 1.0, %v383_v4 }
  0x92   :  { %v70_v49 = vpack.c.bf16 %v273_v44, %v272_v43 }
  0x94   :  { %v74_v27 = vpop.permute.xlu1 %73  ;;  %v88_v33 = vpop.permute.xlu0 %87  ;;  %v71_v59 = vadd.bf16 %v70_v49, %v57_v54 }
  0x95   :  { %vm78_vm10 = vcmp.eq.s32.totalorder %v74_v27, %v16_v31  ;;  %vm92_vm12 = vcmp.eq.s32.totalorder %v88_v33, %v16_v31 }
  0x96   :  { %v274_v51 = vsel %vm78_vm10, 1.0, %v383_v4  ;;  %v276_v53 = vsel %vm92_vm12, 1.0, %v383_v4 }
  0x98   :  { %v77_v29 = vpop.permute.xlu1 %76 }
  0x99   :  { %vm79_vm9 = vcmp.eq.s32.totalorder %v77_v29, %v16_v31  ;;  %v105_v45 = vpop.permute.xlu0 %104 }
  0x9a   :  { %v275_v47 = vsel %vm79_vm9, 1.0, %v383_v4  ;;  %vm107_vm14 = vcmp.eq.s32.totalorder %v105_v45, %v16_v31 }
  0x9b   :  { %v84_v55 = vpack.c.bf16 %v275_v47, %v274_v51  ;;  %v279_v57 = vsel %vm107_vm14, 1.0, %v383_v4 }
  0x9d   :  { %v91_v32 = vpop.permute.xlu1 %90  ;;  %v85_v62 = vadd.bf16 %v84_v55, %v71_v59 }
  0x9e   :  { %vm93_vm11 = vcmp.eq.s32.totalorder %v91_v32, %v16_v31  ;;  %v130_v58 = vpop.permute.xlu0 %129 }
  0x9f   :  { %v277_v52 = vsel %vm93_vm11, 1.0, %v383_v4  ;;  %vm134_vm1 = vcmp.eq.s32.totalorder %v130_v58, %v16_v31 }
  0xa0   :  { %v98_v60 = vpack.c.bf16 %v277_v52, %v276_v53  ;;  %v282_v6 = vsel %vm134_vm1, 1.0, %v383_v4 }
  0xa2   :  { %v102_v40 = vpop.permute.xlu1 %101  ;;  %v99_v2 = vadd.bf16 %v98_v60, %v85_v62 }
  0xa3   :  { %vm106_vm13 = vcmp.eq.s32.totalorder %v102_v40, %v16_v31 }
  0xa4   :  { %v278_v56 = vsel %vm106_vm13, 1.0, %v383_v4 }
  0xa5   :  { %v112_v63 = vpack.c.bf16 %v279_v57, %v278_v56 }
  0xa7   :  { %v116_v50 = vpop.permute.xlu1 %115  ;;  %v113_v7 = vadd.bf16 %v112_v63, %v99_v2 }
  0xa8   :  { %vm120_vm15 = vcmp.eq.s32.totalorder %v116_v50, %v16_v31 }
  0xa9   :  { %v280_v1 = vsel %vm120_vm15, 1.0, %v383_v4 }
  0xab   :  { %v119_v61 = vpop.permute.xlu1 %118 }
  0xac   :  { %vm121_vm0 = vcmp.eq.s32.totalorder %v119_v61, %v16_v31 }
  0xad   :  { %v281_v0 = vsel %vm121_vm0, 1.0, %v383_v4 }
  0xae   :  { %v126_v3 = vpack.c.bf16 %v281_v0, %v280_v1 }
  0xb0   :  { %v133_v5 = vpop.permute.xlu1 %132  ;;  %v127_v9 = vadd.bf16 %v126_v3, %v113_v7 }
  0xb1   :  { %vm135_vm2 = vcmp.eq.s32.totalorder %v133_v5, %v16_v31 }
  0xb2   :  { %v283_v8 = vsel %vm135_vm2, 1.0, %v383_v4 }
  0xb3   :  { %v140_v10 = vpack.c.bf16 %v283_v8, %v282_v6 }
  0xb5   :  { %v141_v11 = vadd.bf16 %v140_v10, %v127_v9 }
  0xb7   :  { %318 = vmatmul.mubr.bf16.vlgmr.msra.gmra.mrb[0].mxu0 %v141_v11 }
 0x18a   :  { %v240_v12 = vpop.f32.mrb[0].mxu0 }
 0x18b   :  { %248 = vst.msk [vmem:[#allocation2] sm:$0xff] %vm247_vm3, %v240_v12  ;;  %v319_v13 = vpop.f32.mrb[1].mxu0 }
 0x18c   :  { %v243_v14 = vpop.f32.mrb[2].mxu0 }
 0x18d   :  { %249 = vst.msk [vmem:[#allocation2 + $0x8] sm:$0xff] %vm247_vm3, %v243_v14  ;;  %v320_v15 = vpop.f32.mrb[3].mxu0 }
 0x18e   :  { %368 = shalt.err (!%p365_p4)
}
 0x18f   :  { %s369_s4 = scalar_lea.hbm %s481_s2, 256 }
 0x190   :  { %p370_p5 = scmp.ne.s32.totalorder %s481_s2, %s369_s4  ;;  %p373_p6 = scmp.lt.u32.totalorder %s369_s4, %s481_s2 }
 0x192   :  { %p375_p7 = pnand %p373_p6, %p370_p5 }
 0x194   :  { %378 = shalt.err (!%p375_p7)
}
 0x195   :  { %s393_s9 = smov 128   ;;  %s394_s10 = smov 8  }
 0x196   :  { %261 = dma.vmem_to_hbm [thread:$0]  %s256_s28, 256, %s481_s2, [#allocation3], %s393_s9, %s393_s9, %s394_s10  }
 0x197   :  { %379 = dma.done.wait [#allocation3], 256  }
 0x198   :  { %380 = vsyncadd [#allocation3], 4294967040 }
 0x199   :  { %265 = vsyncpa [#allocation3], 1 }

</bundles_post_ra>
